<compile_context>
chip_gen: v5e
topology: v5e:2x2
jax: 0.10.0
libtpu: 0.0.40
codegen_flags: <defaults>
</compile_context>

<pallas_src>
import math

import jax
import jax.numpy as jnp
import numpy as np
from jax.experimental import pallas as pl
from jax.experimental.pallas import tpu as pltpu


def _round_up(x, m):
    return ((x + m - 1) // m) * m


def _choose_row_tile(n, target=512):
    """Row-tile size: multiple of 8, <= n, ~target, and >=2 grid steps."""
    if n <= 8:
        return n                          # full-extent block (always legal)
    tn = min(target, (n // 8) * 8)        # multiple of 8, <= n
    if pl.cdiv(n, tn) < 2:                # keep >=2 steps for 2-TC sharding (v7x)
        half = _round_up(-(-n // 2), 8)
        tn = min(max(8, half), (n // 8) * 8)
    return tn


def _tm_linear_kernel(z_ref, w_ref, b_ref, o_ref):
    # z_ref: (tn, c); w_ref: (c, nb_pad); b_ref: (1, nb_pad); o_ref: (tn, nb_pad)
    y = jnp.dot(z_ref[...], w_ref[...], preferred_element_type=jnp.float32)
    o_ref[...] = (y + b_ref[...]).astype(o_ref.dtype)


def tm_score_head_pallas(z, w, b, *, row_tile=None):
    """logits = z @ w + b over the last axis of z.

    z: (..., c)  -- typically (B, i, j, c)
    w: (c, no_bins)   (PyTorch weight, transposed)
    b: (no_bins,)
    returns: (..., no_bins)
    """
    *batch_dims, c = z.shape
    no_bins = w.shape[1]
    n = int(math.prod(batch_dims)) if batch_dims else 1
    z2d = z.reshape(n, c)

    # Lane-friendly output width: zero-pad no_bins to a multiple of 64.
    nb_pad = _round_up(no_bins, 64)
    if nb_pad != no_bins:
        w = jnp.pad(w, ((0, 0), (0, nb_pad - no_bins)))
        b = jnp.pad(b, (0, nb_pad - no_bins))
    b2 = b.reshape(1, nb_pad)

    tn = row_tile if row_tile is not None else _choose_row_tile(n)
    grid = (pl.cdiv(n, tn),)

    # Explicit VMEM budget: double-buffered input/output tiles plus resident
    # (double-buffered) weights/bias, with 2x headroom, capped below v7x's
    # 64 MiB physical VMEM.
    in_item = np.dtype(z.dtype).itemsize
    w_item = np.dtype(w.dtype).itemsize
    est = (2 * tn * c * in_item            # input tiles
           + 2 * tn * nb_pad * in_item     # output tiles
           + 2 * (c + 1) * nb_pad * w_item)
    vmem_limit = int(min(max(2 * est, 4 << 20), 48 << 20))

    out = pl.pallas_call(
        _tm_linear_kernel,
        out_shape=jax.ShapeDtypeStruct((n, nb_pad), z.dtype),
        grid=grid,
        in_specs=[
            pl.BlockSpec((tn, c), lambda i: (i, 0)),
            pl.BlockSpec((c, nb_pad), lambda i: (0, 0)),
            pl.BlockSpec((1, nb_pad), lambda i: (0, 0)),
        ],
        out_specs=pl.BlockSpec((tn, nb_pad), lambda i: (i, 0)),
        compiler_params=pltpu.CompilerParams(
            dimension_semantics=("parallel",),
            vmem_limit_bytes=vmem_limit,
        ),
    )(z2d, w, b2)

    if nb_pad != no_bins:
        out = out[:, :no_bins]
    return out.reshape(*batch_dims, no_bins)


# --------------------------- params & reference ---------------------------
def make_params(key, c, no_bins):
    kw, kb = jax.random.split(key)
    w = jax.random.normal(kw, (c, no_bins), jnp.float32) * 0.02
    b = jax.random.normal(kb, (no_bins,), jnp.float32) * 0.01
    return {"w": w, "b": b}


def reference_forward(params, z):
    return z @ params["w"] + params["b"]


if __name__ == "__main__":
    key = jax.random.PRNGKey(0)
    k1, k2, k3, k4 = jax.random.split(key, 4)

    # Main check: (B, i, j, c) = (2, 16, 16, 128), no_bins = 64.
    B, I, J, C, NB = 2, 16, 16, 128, 64
    z = jax.random.normal(k1, (B, I, J, C), jnp.float32)
    params = make_params(k2, C, NB)

    fwd = jax.jit(lambda p, x: tm_score_head_pallas(x, p["w"], p["b"]))
    logits = jax.block_until_ready(fwd(params, z))
    assert logits.shape == (B, I, J, NB)
    np.testing.assert_allclose(np.asarray(logits),
                               np.asarray(reference_forward(params, z)),
                               rtol=2e-4, atol=2e-4)

    # Tail / padding check: row count not divisible by the tile and no_bins
    # not 64-aligned (exercises cdiv partial tiles + zero-padded out columns).
    B2, I2, J2, C2, NB2 = 1, 9, 7, 64, 50
    z2 = jax.random.normal(k3, (B2, I2, J2, C2), jnp.float32)
    params2 = make_params(k4, C2, NB2)
    logits2 = jax.block_until_ready(
        jax.jit(lambda p, x: tm_score_head_pallas(x, p["w"], p["b"]))(params2, z2))
    assert logits2.shape == (B2, I2, J2, NB2)
    np.testing.assert_allclose(np.asarray(logits2),
                               np.asarray(reference_forward(params2, z2)),
                               rtol=2e-4, atol=2e-4)

    print("KERNEL_OK")
</pallas_src>

<mosaic_0001>
module attributes {stable_mosaic.version = 11 : i64} {
  func.func @_tm_linear_kernel(%arg0: i32, %arg1: memref<256x128xf32, #tpu.memory_space<vmem>>, %arg2: memref<128x64xf32, #tpu.memory_space<vmem>>, %arg3: memref<1x64xf32, #tpu.memory_space<vmem>>, %arg4: memref<256x64xf32, #tpu.memory_space<vmem>>) attributes {dimension_semantics = [#tpu.dimension_semantics<parallel>], iteration_bounds = array<i64: 2>, scalar_prefetch = 0 : i64, scratch_operands = 0 : i64, tpu.core_type = #tpu.core_type<tc>, window_params = [{transform_indices = @transform_0, window_bounds = array<i64: 256, 128>}, {pipeline_mode = #tpu.pipeline_mode<synchronous>, transform_indices = @transform_1, window_bounds = array<i64: 128, 64>}, {pipeline_mode = #tpu.pipeline_mode<synchronous>, transform_indices = @transform_2, window_bounds = array<i64: 1, 64>}, {transform_indices = @transform_3, window_bounds = array<i64: 256, 64>}]} {
    %c0 = arith.constant 0 : index
    %c0_0 = arith.constant 0 : index
    %0 = vector.load %arg1[%c0, %c0_0] : memref<256x128xf32, #tpu.memory_space<vmem>>, vector<256x128xf32>
    %c0_1 = arith.constant 0 : index
    %c0_2 = arith.constant 0 : index
    %1 = vector.load %arg2[%c0_1, %c0_2] : memref<128x64xf32, #tpu.memory_space<vmem>>, vector<128x64xf32>
    %cst = arith.constant dense<0.000000e+00> : vector<256x64xf32>
    %2 = tpu.matmul %0, %1, %cst {dimension_numbers = #tpu.dot_dimension_numbers<[1], [0], [0], [1], [0, 0, 1, 1], [], []>} : vector<256x128xf32>, vector<128x64xf32>, vector<256x64xf32> -> vector<256x64xf32>
    %c0_3 = arith.constant 0 : index
    %c0_4 = arith.constant 0 : index
    %3 = vector.load %arg3[%c0_3, %c0_4] : memref<1x64xf32, #tpu.memory_space<vmem>>, vector<1x64xf32>
    %4 = vector.broadcast %3 : vector<1x64xf32> to vector<256x64xf32>
    %5 = arith.addf %2, %4 : vector<256x64xf32>
    %c0_5 = arith.constant 0 : index
    %c0_6 = arith.constant 0 : index
    %6 = vector.load %arg4[%c0_5, %c0_6] : memref<256x64xf32, #tpu.memory_space<vmem>>, vector<256x64xf32>
    tpu.vector_store %arg4[%c0_5, %c0_6], %5 {strides = array<i32>} : memref<256x64xf32, #tpu.memory_space<vmem>>, vector<256x64xf32>,
    return
  }
  func.func @transform_0(%arg0: i32) -> (i32, i32) {
    %c0_i32 = arith.constant 0 : i32
    %c0_i32_0 = arith.constant 0 : i32
    return %arg0, %c0_i32 : i32, i32
  }
  func.func @transform_1(%arg0: i32) -> (i32, i32) {
    %c0_i32 = arith.constant 0 : i32
    %c0_i32_0 = arith.constant 0 : i32
    %c0_i32_1 = arith.constant 0 : i32
    return %c0_i32, %c0_i32_0 : i32, i32
  }
  func.func @transform_2(%arg0: i32) -> (i32, i32) {
    %c0_i32 = arith.constant 0 : i32
    %c0_i32_0 = arith.constant 0 : i32
    %c0_i32_1 = arith.constant 0 : i32
    return %c0_i32, %c0_i32_0 : i32, i32
  }
  func.func @transform_3(%arg0: i32) -> (i32, i32) {
    %c0_i32 = arith.constant 0 : i32
    %c0_i32_0 = arith.constant 0 : i32
    return %arg0, %c0_i32 : i32, i32
  }
}

</mosaic_0001>

<bundles_post_ra>
// kernel: _lambda_.1
= control target key start
LH: loop header
LB: loop body
LE: loop exit
PB: predicated region body
PF: predicated region fallthrough
CT: control target
= control target key end

     0   :  { %8 = vsyncpa [#allocation3], 0  ;;  %s1034_s0 = inlined_call_operand.hbm [shape: f32[512,128], index: 0, kind: input, shape index: {}]   ;;  %s1035_s1 = inlined_call_operand.vmem [shape: f32[128,64], index: 1, kind: input, shape index: {}]   ;;  %s1036_s2 = inlined_call_operand.vmem [shape: f32[1,64], index: 2, kind: input, shape index: {}]   ;;  %s1037_s3 = inlined_call_operand.hbm [shape: f32[512,64], index: 3, kind: output, shape index: {}]  }
   0x1   :  { %10 = vsyncpa [#allocation3 + $0x1], 0 }
   0x2   :  { %11 = vsyncpa [#allocation4], 0 }
   0x3   :  { %13 = vsyncpa [#allocation4 + $0x1], 0  ;;  %s717_s12 = smov 0   ;;  %s719_s13 = smov 0  }
   0x4   :  { %s721_s14 = smov 0   ;;  %s723_s15 = smov 0  }
   0x5 LB: > { %s738_s16 = sadd.s32 4294967295, %s691_s15   ;;  %s480_s17 = sadd.s32 4294967294, %s691_s15   ;;  %s691_s15 = sphi %s723_s15, %s1047_s15   ;;  %s687_s14 = sphi %s721_s14, %s1046_s14   ;;  %s683_s13 = sphi %s719_s13, %s1045_s13   ;;  %s679_s12 = sphi %s717_s12, %s1044_s12  }
   0x6   : > { %s742_s18 = sadd.s32 1, %s691_s15   ;;  %s26_s19 = sadd.s32 1, %s687_s14 }
   0x7   : > { %s23_s20 = ssub.s32 %s691_s15, %s742_s18  ;;  %p33_p0 = scmp.ne.s32.totalorder %s687_s14, %s683_s13 }
   0x8   : > { %p24_p1 = scmp.eq.s32.totalorder %s23_s20, 0  ;;  %p34_p2 = scmp.eq.s32.totalorder %s691_s15, 0 }
   0x9   : > { %p39_p3 = scmp.ne.s32.totalorder %s683_s13, %s679_s12  ;;  %p40_p4 = scmp.eq.s32.totalorder %s738_s16, 0 }
   0xa   : > { %s754_s21 = scalar_select %p24_p1, %s687_s14, %s26_s19  }
   0xb   : > { %p756_p5 = por %p34_p2, %p33_p0  ;;  %p760_p6 = por %p40_p4, %p39_p3 }
   0xc   : > { %p105_p7 = scmp.eq.s32.totalorder %s738_s16, 1  ;;  %p111_p8 = scmp.eq.s32.totalorder %s480_s17, 1 }
   0xd   : > { %p556_p10 = scmp.lt.s32.totalorder %s691_s15, 2  ;;  %s137_s26 = sand.u32 1, %s687_s14  }
   0xe   : > { %p767_p11 = por %p105_p7, %p33_p0  ;;  %p771_p12 = por %p111_p8, %p39_p3 }
   0xf   : > { %s494_s27 = sshll.u32 %s691_s15, 8  ;;  %s483_s28 = sshll.u32 %s137_s26, 8 }
  0x10   : > { %s146_s4 = scalar_lea.hbm %s1034_s0, %s494_s27  ;;  %s141_s6 = scalar_lea.vmem [#allocation2], %s483_s28 }
  0x11   : > { %s147_s5 = sshll.u32 %s146_s4, 4  ;;  %s149_s7 = sshll.u32 %s141_s6, 4  ;;  %s148_s5 = int_to_ptr.hbm [resolvable:$true] %s147_s5  ;;  %s150_s7 = int_to_ptr.vmem [resolvable:$true] %s149_s7 }
  0x12   : > { %p782_p13 = pnand %p556_p10, %p756_p5  ;;  %p486_p0 = scmp.ge.s32.totalorder %s691_s15, 1 }
  0x13   : > { %p157_p1 = scmp.lt.s32.totalorder %s691_s15, 3  ;;  %s138_s9 = scalar_lea.sflag [#allocation3], %s137_s26 }
  0x14   : > { %s595_s10 = sshra.s32 %s148_s5, 4  ;;  %p599_p3 = pneg %p782_p13  ;;  %s596_s10 = int_to_ptr.hbm [resolvable:$true] %s595_s10 }
  0x15   : > { %s597_s11 = scalar_lea.hbm %s596_s10, 256  ;;  %s602_s20 = scalar_lea.hbm %s1034_s0, 512 }
  0x16   : > { %p598_p2 = scmp.ne.s32.totalorder %s596_s10, %s597_s11  ;;  %p603_p5 = scmp.lt.s32.totalorder %s596_s10, %s1034_s0 }
  0x17   : > { %p604_p8 = scmp.lt.s32.totalorder %s602_s20, %s597_s11 }
  0x18   : > { %p600_p4 = pnand %p599_p3, %p598_p2 }
  0x19   : > { %p605_p10 = por %p604_p8, %p603_p5 }
  0x1a   : > { %p601_p7 = pneg %p600_p4 }
  0x1c   : > { %p606_p9 = pnand %p605_p10, %p601_p7 }
  0x1e   : > { %609 = shalt.err (!%p606_p9)
}
  0x1f   : > { %s693_s26 = smov 128   ;;  %s694_s28 = smov 8  }
  0x20   : > { %551 = dma.hbm_to_vmem [thread:$0]  (!%p782_p13), %s148_s5, 4096, %s150_s7, %s138_s9, %s693_s26, %s693_s26, %s694_s28  }
  0x21   : > { %p158_p2 = pnand %p486_p0, %p157_p1 }
  0x22   : > { %s803_s29 = sand.u32 (!%p158_p2), 1, %s683_s13  }
  0x23   : > { %161 = sbr.rel (%p158_p2) target bundleno = 268 (0x10c), region = 32  ;;  %s487_s30 = sshll.u32 (!%p158_p2), %s803_s29, 8 }
  0x24   : > { %s164_s4 = scalar_lea.sflag (!%p158_p2), [#allocation3], %s803_s29  ;;  %s809_s6 = scalar_lea.vmem (!%p158_p2), [#allocation2], %s487_s30 }
  0x28   : > { %670 = dma.done.wait (%p760_p6), %s164_s4, 4096  }
  0x29   : > { %672 = vsyncadd (%p760_p6), %s164_s4, 4294963200  ;;  %v240_v0 = vld [vmem:[%s1035_s1 + $0x78] sm:$0xff]  ;;  %v239_v1 = vld [vmem:[%s1035_s1 + $0x70] sm:$0xff]  ;;  %vm358_vm0 = vcmask 523264   ;;  %s904_s10 = scalar_lea.vmem [#allocation5], %s487_s30  ;;  %s495_s30 = sshll.u32 %s738_s16, 8 }
  0x2a   : > { %497 = vmatpush.msra.mxu2 %v240_v0  ;;  %498 = vmatpush.msra.mxu3 %v240_v0  ;;  %v238_v2 = vld [vmem:[%s1035_s1 + $0x68] sm:$0xff]  ;;  %v237_v3 = vld [vmem:[%s1035_s1 + $0x60] sm:$0xff]  ;;  %v236_v4 = vld [vmem:[%s1035_s1 + $0x58] sm:$0xff]  ;;  %s403_s23 = scalar_lea.hbm %s1037_s3, %s495_s30  ;;  %s404_s16 = sshll.u32 %s904_s10, 4  ;;  %s405_s16 = int_to_ptr.vmem [resolvable:$true] %s404_s16 }
  0x2b   : > { %245 = vmatpush.msra.mxu0 %v240_v0  ;;  %496 = vmatpush.msra.mxu1 %v240_v0  ;;  %v235_v5 = vld [vmem:[%s1035_s1 + $0x50] sm:$0xff]  ;;  %v234_v6 = vld [vmem:[%s1035_s1 + $0x48] sm:$0xff]  ;;  %v233_v7 = vld [vmem:[%s1035_s1 + $0x40] sm:$0xff]  ;;  %s406_s17 = sshll.u32 %s403_s23, 4  ;;  %s392_s19 = scalar_lea.sflag [#allocation4], %s803_s29  ;;  %s407_s17 = int_to_ptr.hbm [resolvable:$true] %s406_s17 }
  0x2c   : > { %500 = vmatpush.msra.mxu2 %v239_v1  ;;  %501 = vmatpush.msra.mxu3 %v239_v1  ;;  %v232_v8 = vld [vmem:[%s1035_s1 + $0x38] sm:$0xff]  ;;  %v231_v9 = vld [vmem:[%s1035_s1 + $0x30] sm:$0xff]  ;;  %v230_v10 = vld [vmem:[%s1035_s1 + $0x28] sm:$0xff]  ;;  %s639_s20 = sshra.s32 %s407_s17, 4  ;;  %s645_s28 = scalar_lea.hbm %s1037_s3, 512  ;;  %s640_s20 = int_to_ptr.hbm [resolvable:$true] %s639_s20 }
  0x2d   : > { %246 = vmatpush.msra.mxu0 %v239_v1  ;;  %499 = vmatpush.msra.mxu1 %v239_v1  ;;  %v229_v11 = vld [vmem:[%s1035_s1 + $0x20] sm:$0xff]  ;;  %v228_v12 = vld [vmem:[%s1035_s1 + $0x18] sm:$0xff]  ;;  %v227_v13 = vld [vmem:[%s1035_s1 + $0x10] sm:$0xff]  ;;  %s641_s22 = scalar_lea.hbm %s640_s20, 256  ;;  %p646_p0 = scmp.lt.s32.totalorder %s640_s20, %s1037_s3 }
  0x2e   : > { %503 = vmatpush.msra.mxu2 %v238_v2  ;;  %504 = vmatpush.msra.mxu3 %v238_v2  ;;  %v226_v14 = vld [vmem:[%s1035_s1 + $0x8] sm:$0xff]  ;;  %v225_v15 = vld [vmem:[%s1035_s1] sm:$0xff]  ;;  %v211_v24 = vld [vmem:[%s809_s6 + $0x90] sm:$0xff]  ;;  %p642_p6 = scmp.ne.s32.totalorder %s640_s20, %s641_s22  ;;  %p647_p1 = scmp.lt.s32.totalorder %s645_s28, %s641_s22 }
  0x2f   : > { %247 = vmatpush.msra.mxu0 %v238_v2  ;;  %502 = vmatpush.msra.mxu1 %v238_v2  ;;  %v209_v16 = vld [vmem:[%s809_s6 + $0x80] sm:$0xff]  ;;  %v210_v20 = vld [vmem:[%s809_s6 + $0x88] sm:$0xff]  ;;  %v219_v25 = vld [vmem:[%s809_s6 + $0xd0] sm:$0xff] }
  0x30   : > { %506 = vmatpush.msra.mxu2 %v237_v3  ;;  %507 = vmatpush.msra.mxu3 %v237_v3  ;;  %v217_v17 = vld [vmem:[%s809_s6 + $0xc0] sm:$0xff]  ;;  %v218_v21 = vld [vmem:[%s809_s6 + $0xc8] sm:$0xff]  ;;  %v195_v26 = vld [vmem:[%s809_s6 + $0x10] sm:$0xff]  ;;  %p643_p9 = pnand %p642_p6, %p767_p11  ;;  %p648_p3 = por %p647_p1, %p646_p0 }
  0x31   : > { %248 = vmatpush.msra.mxu0 %v237_v3  ;;  %505 = vmatpush.msra.mxu1 %v237_v3  ;;  %v193_v18 = vld [vmem:[%s809_s6] sm:$0xff]  ;;  %v194_v22 = vld [vmem:[%s809_s6 + $0x8] sm:$0xff]  ;;  %v203_v27 = vld [vmem:[%s809_s6 + $0x50] sm:$0xff] }
  0x32   : > { %509 = vmatpush.msra.mxu2 %v236_v4  ;;  %510 = vmatpush.msra.mxu3 %v236_v4  ;;  %v201_v19 = vld [vmem:[%s809_s6 + $0x40] sm:$0xff]  ;;  %v202_v23 = vld [vmem:[%s809_s6 + $0x48] sm:$0xff]  ;;  %v212_v28 = vld [vmem:[%s809_s6 + $0x98] sm:$0xff]  ;;  %p644_p13 = pneg %p643_p9 }
  0x33   : > { %249 = vmatpush.msra.mxu0 %v236_v4  ;;  %508 = vmatpush.msra.mxu1 %v236_v4  ;;  %v220_v29 = vld [vmem:[%s809_s6 + $0xd8] sm:$0xff]  ;;  %v213_v32 = vld [vmem:[%s809_s6 + $0xa0] sm:$0xff]  ;;  %v214_v36 = vld [vmem:[%s809_s6 + $0xa8] sm:$0xff] }
  0x34   : > { %512 = vmatpush.msra.mxu2 %v235_v5  ;;  %513 = vmatpush.msra.mxu3 %v235_v5  ;;  %v196_v30 = vld [vmem:[%s809_s6 + $0x18] sm:$0xff]  ;;  %v221_v33 = vld [vmem:[%s809_s6 + $0xe0] sm:$0xff]  ;;  %v222_v37 = vld [vmem:[%s809_s6 + $0xe8] sm:$0xff]  ;;  %p649_p4 = pnand %p648_p3, %p644_p13 }
  0x35   : > { %250 = vmatpush.msra.mxu0 %v235_v5  ;;  %511 = vmatpush.msra.mxu1 %v235_v5  ;;  %v204_v31 = vld [vmem:[%s809_s6 + $0x58] sm:$0xff]  ;;  %v197_v34 = vld [vmem:[%s809_s6 + $0x20] sm:$0xff]  ;;  %v198_v38 = vld [vmem:[%s809_s6 + $0x28] sm:$0xff] }
  0x36   : > { %515 = vmatpush.msra.mxu2 %v234_v6  ;;  %516 = vmatpush.msra.mxu3 %v234_v6  ;;  %v205_v35 = vld [vmem:[%s809_s6 + $0x60] sm:$0xff]  ;;  %v206_v39 = vld [vmem:[%s809_s6 + $0x68] sm:$0xff]  ;;  %v215_v40 = vld [vmem:[%s809_s6 + $0xb0] sm:$0xff] }
  0x37   : > { %251 = vmatpush.msra.mxu0 %v234_v6  ;;  %514 = vmatpush.msra.mxu1 %v234_v6  ;;  %v223_v41 = vld [vmem:[%s809_s6 + $0xf0] sm:$0xff]  ;;  %v216_v44 = vld [vmem:[%s809_s6 + $0xb8] sm:$0xff]  ;;  %v898_v48 = vld [vmem:[%s1036_s2] ss:$0 sm:$0xff] }
  0x38   : > { %518 = vmatpush.msra.mxu2 %v233_v7  ;;  %519 = vmatpush.msra.mxu3 %v233_v7  ;;  %v199_v42 = vld [vmem:[%s809_s6 + $0x30] sm:$0xff]  ;;  %v224_v45 = vld [vmem:[%s809_s6 + $0xf8] sm:$0xff] }
  0x39   : > { %252 = vmatpush.msra.mxu0 %v233_v7  ;;  %517 = vmatpush.msra.mxu1 %v233_v7  ;;  %v207_v43 = vld [vmem:[%s809_s6 + $0x70] sm:$0xff]  ;;  %v200_v46 = vld [vmem:[%s809_s6 + $0x38] sm:$0xff] }
  0x3a   : > { %521 = vmatpush.msra.mxu2 %v232_v8  ;;  %522 = vmatpush.msra.mxu3 %v232_v8  ;;  %v208_v47 = vld [vmem:[%s809_s6 + $0x78] sm:$0xff] }
  0x3b   : > { %253 = vmatpush.msra.mxu0 %v232_v8  ;;  %520 = vmatpush.msra.mxu1 %v232_v8 }
  0x3c   : > { %524 = vmatpush.msra.mxu2 %v231_v9  ;;  %525 = vmatpush.msra.mxu3 %v231_v9 }
  0x3d   : > { %254 = vmatpush.msra.mxu0 %v231_v9  ;;  %523 = vmatpush.msra.mxu1 %v231_v9 }
  0x3e   : > { %527 = vmatpush.msra.mxu2 %v230_v10  ;;  %528 = vmatpush.msra.mxu3 %v230_v10 }
  0x3f   : > { %255 = vmatpush.msra.mxu0 %v230_v10  ;;  %526 = vmatpush.msra.mxu1 %v230_v10 }
  0x40   : > { %530 = vmatpush.msra.mxu2 %v229_v11  ;;  %531 = vmatpush.msra.mxu3 %v229_v11 }
  0x41   : > { %256 = vmatpush.msra.mxu0 %v229_v11  ;;  %529 = vmatpush.msra.mxu1 %v229_v11 }
  0x42   : > { %533 = vmatpush.msra.mxu2 %v228_v12  ;;  %534 = vmatpush.msra.mxu3 %v228_v12 }
  0x43   : > { %257 = vmatpush.msra.mxu0 %v228_v12  ;;  %532 = vmatpush.msra.mxu1 %v228_v12 }
  0x44   : > { %536 = vmatpush.msra.mxu2 %v227_v13  ;;  %537 = vmatpush.msra.mxu3 %v227_v13 }
  0x45   : > { %258 = vmatpush.msra.mxu0 %v227_v13  ;;  %535 = vmatpush.msra.mxu1 %v227_v13 }
  0x46   : > { %539 = vmatpush.msra.mxu2 %v226_v14  ;;  %540 = vmatpush.msra.mxu3 %v226_v14 }
  0x47   : > { %259 = vmatpush.msra.mxu0 %v226_v14  ;;  %538 = vmatpush.msra.mxu1 %v226_v14 }
  0x48   : > { %542 = vmatpush.msra.mxu2 %v225_v15  ;;  %543 = vmatpush.msra.mxu3 %v225_v15 }
  0x49   : > { %309 = vmatmul.f32.vlgmr.msra.gmra.mxu2 %v209_v16  ;;  %333 = vmatmul.f32.vlgmr.msra.gmra.mxu3 %v217_v17 }
  0x4a   : > { %260 = vmatpush.msra.mxu0 %v225_v15  ;;  %541 = vmatpush.msra.mxu1 %v225_v15 }
  0x4b   : > { %261 = vmatmul.f32.vlgmr.msra.gmra.mxu0 %v193_v18  ;;  %285 = vmatmul.f32.vlgmr.msra.gmra.mxu1 %v201_v19 }
  0x51   : > { %312 = vmatmul.f32.gmra.mxu2 %v210_v20  ;;  %336 = vmatmul.f32.gmra.mxu3 %v218_v21 }
  0x53   : > { %264 = vmatmul.f32.gmra.mxu0 %v194_v22  ;;  %288 = vmatmul.f32.gmra.mxu1 %v202_v23 }
  0x59   : > { %315 = vmatmul.f32.gmra.mxu2 %v211_v24  ;;  %339 = vmatmul.f32.gmra.mxu3 %v219_v25 }
  0x5b   : > { %267 = vmatmul.f32.gmra.mxu0 %v195_v26  ;;  %291 = vmatmul.f32.gmra.mxu1 %v203_v27 }
  0x61   : > { %318 = vmatmul.f32.gmra.mxu2 %v212_v28  ;;  %342 = vmatmul.f32.gmra.mxu3 %v220_v29 }
  0x63   : > { %270 = vmatmul.f32.gmra.mxu0 %v196_v30  ;;  %294 = vmatmul.f32.gmra.mxu1 %v204_v31 }
  0x69   : > { %321 = vmatmul.f32.gmra.mxu2 %v213_v32  ;;  %345 = vmatmul.f32.gmra.mxu3 %v221_v33 }
  0x6b   : > { %273 = vmatmul.f32.gmra.mxu0 %v197_v34  ;;  %297 = vmatmul.f32.gmra.mxu1 %v205_v35 }
  0x71   : > { %324 = vmatmul.f32.gmra.mxu2 %v214_v36  ;;  %348 = vmatmul.f32.gmra.mxu3 %v222_v37 }
  0x73   : > { %276 = vmatmul.f32.gmra.mxu0 %v198_v38  ;;  %300 = vmatmul.f32.gmra.mxu1 %v206_v39 }
  0x79   : > { %327 = vmatmul.f32.gmra.mxu2 %v215_v40  ;;  %351 = vmatmul.f32.gmra.mxu3 %v223_v41 }
  0x7b   : > { %279 = vmatmul.f32.gmra.mxu0 %v199_v42  ;;  %303 = vmatmul.f32.gmra.mxu1 %v207_v43 }
  0x81   : > { %330 = vmatmul.f32.gmra.mxu2 %v216_v44  ;;  %354 = vmatmul.f32.gmra.mxu3 %v224_v45 }
  0x83   : > { %282 = vmatmul.f32.gmra.mxu0 %v200_v46  ;;  %306 = vmatmul.f32.gmra.mxu1 %v208_v47 }
  0xc8   : > { %v262_v49 = vpop.f32.mrf.mxu0  ;;  %v286_v50 = vpop.f32.mrf.mxu1 }
  0xc9   : > { %v263_v51 = vadd.f32 %v898_v48, %v262_v49  ;;  %v287_v52 = vadd.f32 %v898_v48, %v286_v50 }
  0xcb   : > { %359 = vst.msk [vmem:[%s904_s10] sm:$0xff] %vm358_vm0, %v263_v51 }
  0xcc   : > { %367 = vst.msk [vmem:[%s904_s10 + $0x40] sm:$0xff] %vm358_vm0, %v287_v52  ;;  %v310_v53 = vpop.f32.mrf.mxu2  ;;  %v334_v54 = vpop.f32.mrf.mxu3 }
  0xcd   : > { %v311_v55 = vadd.f32 %v898_v48, %v310_v53  ;;  %v335_v56 = vadd.f32 %v898_v48, %v334_v54 }
  0xcf   : > { %375 = vst.msk [vmem:[%s904_s10 + $0x80] sm:$0xff] %vm358_vm0, %v311_v55 }
  0xd0   : > { %383 = vst.msk [vmem:[%s904_s10 + $0xc0] sm:$0xff] %vm358_vm0, %v335_v56  ;;  %v265_v57 = vpop.f32.mrf.mxu0  ;;  %v289_v58 = vpop.f32.mrf.mxu1 }
  0xd1   : > { %v266_v59 = vadd.f32 %v898_v48, %v265_v57  ;;  %v290_v60 = vadd.f32 %v898_v48, %v289_v58 }
  0xd3   : > { %360 = vst.msk [vmem:[%s904_s10 + $0x8] sm:$0xff] %vm358_vm0, %v266_v59 }
  0xd4   : > { %368 = vst.msk [vmem:[%s904_s10 + $0x48] sm:$0xff] %vm358_vm0, %v290_v60  ;;  %v313_v61 = vpop.f32.mrf.mxu2  ;;  %v337_v62 = vpop.f32.mrf.mxu3 }
  0xd5   : > { %v314_v63 = vadd.f32 %v898_v48, %v313_v61  ;;  %v338_v0 = vadd.f32 %v898_v48, %v337_v62 }
  0xd7   : > { %376 = vst.msk [vmem:[%s904_s10 + $0x88] sm:$0xff] %vm358_vm0, %v314_v63 }
  0xd8   : > { %384 = vst.msk [vmem:[%s904_s10 + $0xc8] sm:$0xff] %vm358_vm0, %v338_v0  ;;  %v268_v1 = vpop.f32.mrf.mxu0  ;;  %v292_v2 = vpop.f32.mrf.mxu1 }
  0xd9   : > { %v269_v3 = vadd.f32 %v898_v48, %v268_v1  ;;  %v293_v4 = vadd.f32 %v898_v48, %v292_v2 }
  0xdb   : > { %361 = vst.msk [vmem:[%s904_s10 + $0x10] sm:$0xff] %vm358_vm0, %v269_v3 }
  0xdc   : > { %369 = vst.msk [vmem:[%s904_s10 + $0x50] sm:$0xff] %vm358_vm0, %v293_v4  ;;  %v316_v5 = vpop.f32.mrf.mxu2  ;;  %v340_v6 = vpop.f32.mrf.mxu3 }
  0xdd   : > { %v317_v7 = vadd.f32 %v898_v48, %v316_v5  ;;  %v341_v8 = vadd.f32 %v898_v48, %v340_v6 }
  0xdf   : > { %377 = vst.msk [vmem:[%s904_s10 + $0x90] sm:$0xff] %vm358_vm0, %v317_v7 }
  0xe0   : > { %385 = vst.msk [vmem:[%s904_s10 + $0xd0] sm:$0xff] %vm358_vm0, %v341_v8  ;;  %v271_v9 = vpop.f32.mrf.mxu0  ;;  %v295_v10 = vpop.f32.mrf.mxu1 }
  0xe1   : > { %v272_v11 = vadd.f32 %v898_v48, %v271_v9  ;;  %v296_v12 = vadd.f32 %v898_v48, %v295_v10 }
  0xe3   : > { %362 = vst.msk [vmem:[%s904_s10 + $0x18] sm:$0xff] %vm358_vm0, %v272_v11 }
  0xe4   : > { %370 = vst.msk [vmem:[%s904_s10 + $0x58] sm:$0xff] %vm358_vm0, %v296_v12  ;;  %v319_v13 = vpop.f32.mrf.mxu2  ;;  %v343_v14 = vpop.f32.mrf.mxu3 }
  0xe5   : > { %v320_v15 = vadd.f32 %v898_v48, %v319_v13  ;;  %v344_v16 = vadd.f32 %v898_v48, %v343_v14 }
  0xe7   : > { %378 = vst.msk [vmem:[%s904_s10 + $0x98] sm:$0xff] %vm358_vm0, %v320_v15 }
  0xe8   : > { %386 = vst.msk [vmem:[%s904_s10 + $0xd8] sm:$0xff] %vm358_vm0, %v344_v16  ;;  %v274_v17 = vpop.f32.mrf.mxu0  ;;  %v298_v18 = vpop.f32.mrf.mxu1 }
  0xe9   : > { %v275_v19 = vadd.f32 %v898_v48, %v274_v17  ;;  %v299_v20 = vadd.f32 %v898_v48, %v298_v18 }
  0xeb   : > { %363 = vst.msk [vmem:[%s904_s10 + $0x20] sm:$0xff] %vm358_vm0, %v275_v19 }
  0xec   : > { %371 = vst.msk [vmem:[%s904_s10 + $0x60] sm:$0xff] %vm358_vm0, %v299_v20  ;;  %v322_v21 = vpop.f32.mrf.mxu2  ;;  %v346_v22 = vpop.f32.mrf.mxu3 }
  0xed   : > { %v323_v23 = vadd.f32 %v898_v48, %v322_v21  ;;  %v347_v24 = vadd.f32 %v898_v48, %v346_v22 }
  0xef   : > { %379 = vst.msk [vmem:[%s904_s10 + $0xa0] sm:$0xff] %vm358_vm0, %v323_v23 }
  0xf0   : > { %387 = vst.msk [vmem:[%s904_s10 + $0xe0] sm:$0xff] %vm358_vm0, %v347_v24  ;;  %v277_v25 = vpop.f32.mrf.mxu0  ;;  %v301_v26 = vpop.f32.mrf.mxu1 }
  0xf1   : > { %v278_v27 = vadd.f32 %v898_v48, %v277_v25  ;;  %v302_v28 = vadd.f32 %v898_v48, %v301_v26 }
  0xf3   : > { %364 = vst.msk [vmem:[%s904_s10 + $0x28] sm:$0xff] %vm358_vm0, %v278_v27 }
  0xf4   : > { %372 = vst.msk [vmem:[%s904_s10 + $0x68] sm:$0xff] %vm358_vm0, %v302_v28  ;;  %v325_v29 = vpop.f32.mrf.mxu2  ;;  %v349_v30 = vpop.f32.mrf.mxu3 }
  0xf5   : > { %v326_v31 = vadd.f32 %v898_v48, %v325_v29  ;;  %v350_v32 = vadd.f32 %v898_v48, %v349_v30 }
  0xf7   : > { %380 = vst.msk [vmem:[%s904_s10 + $0xa8] sm:$0xff] %vm358_vm0, %v326_v31 }
  0xf8   : > { %388 = vst.msk [vmem:[%s904_s10 + $0xe8] sm:$0xff] %vm358_vm0, %v350_v32  ;;  %v280_v33 = vpop.f32.mrf.mxu0  ;;  %v304_v34 = vpop.f32.mrf.mxu1 }
  0xf9   : > { %v281_v35 = vadd.f32 %v898_v48, %v280_v33  ;;  %v305_v36 = vadd.f32 %v898_v48, %v304_v34 }
  0xfb   : > { %365 = vst.msk [vmem:[%s904_s10 + $0x30] sm:$0xff] %vm358_vm0, %v281_v35 }
  0xfc   : > { %373 = vst.msk [vmem:[%s904_s10 + $0x70] sm:$0xff] %vm358_vm0, %v305_v36  ;;  %v328_v37 = vpop.f32.mrf.mxu2  ;;  %v352_v38 = vpop.f32.mrf.mxu3 }
  0xfd   : > { %v329_v39 = vadd.f32 %v898_v48, %v328_v37  ;;  %v353_v40 = vadd.f32 %v898_v48, %v352_v38 }
  0xff   : > { %381 = vst.msk [vmem:[%s904_s10 + $0xb0] sm:$0xff] %vm358_vm0, %v329_v39 }
 0x100   : > { %389 = vst.msk [vmem:[%s904_s10 + $0xf0] sm:$0xff] %vm358_vm0, %v353_v40  ;;  %v283_v41 = vpop.f32.mrf.mxu0  ;;  %v307_v42 = vpop.f32.mrf.mxu1 }
 0x101   : > { %v284_v43 = vadd.f32 %v898_v48, %v283_v41  ;;  %v308_v44 = vadd.f32 %v898_v48, %v307_v42 }
 0x103   : > { %366 = vst.msk [vmem:[%s904_s10 + $0x38] sm:$0xff] %vm358_vm0, %v284_v43 }
 0x104   : > { %374 = vst.msk [vmem:[%s904_s10 + $0x78] sm:$0xff] %vm358_vm0, %v308_v44  ;;  %v331_v45 = vpop.f32.mrf.mxu2  ;;  %v355_v46 = vpop.f32.mrf.mxu3 }
 0x105   : > { %v332_v47 = vadd.f32 %v898_v48, %v331_v45  ;;  %v356_v49 = vadd.f32 %v898_v48, %v355_v46 }
 0x107   : > { %382 = vst.msk [vmem:[%s904_s10 + $0xb8] sm:$0xff] %vm358_vm0, %v332_v47 }
 0x108   : > { %390 = vst.msk [vmem:[%s904_s10 + $0xf8] sm:$0xff] %vm358_vm0, %v356_v49 }
 0x109   : > { %652 = shalt.err (!%p649_p4)
}
 0x10a   : > { %s695_s29 = smov 128   ;;  %s696_s7 = smov 8  }
 0x10b   : > { %546 = dma.vmem_to_hbm [thread:$0]  (%p767_p11), %s405_s16, 4096, %s407_s17, %s392_s19, %s695_s29, %s695_s29, %s696_s7  }
 0x10c PF: > { %s421_s8 = sand.u32 1, %s679_s12   ;;  %p1043_p7 = scmp.ge.s32.totalorder %s691_s15, 2 }
 0x10d   : > { %s422_s9 = scalar_lea.sflag [#allocation4], %s421_s8 }
 0x10e   : > { %p553_p5 = pnand %p1043_p7, %p771_p12 }
 0x110   : > { %p554_p8 = pneg %p553_p5 }
 0x112   : > { %674 = dma.done.wait (%p554_p8), %s422_s9, 4096  }
 0x113   : > { %676 = vsyncadd (%p554_p8), %s422_s9, 4294963200  ;;  %p16_p10 = scmp.ge.s32.totalorder %s742_s18, 4   ;;  %s1044_s12 = smov %s683_s13 }
 0x114   : > { %s1045_s13 = smov %s687_s14  ;;  %s1046_s14 = smov %s754_s21 }
 0x115   : > { %s1047_s15 = smov %s742_s18  ;;  %18 = sbr.rel (!%p16_p10) target bundleno = 5 (0x5), region = 77 }
 0x11a   :  { %428 = vsyncpa [#allocation3], 1 }
 0x11b   :  { %430 = vsyncpa [#allocation3 + $0x1], 1 }
 0x11c   :  { %431 = vsyncpa [#allocation4], 1 }
 0x11d   :  { %433 = vsyncpa [#allocation4 + $0x1], 1 }

</bundles_post_ra>
